<compile_context>
chip_gen: v6e
topology: v6e:2x2x1
jax: 0.10.0
libtpu: 0.0.40
codegen_flags: <defaults>
</compile_context>

<pallas_src>
import jax
import jax.numpy as jnp
from jax.experimental import pallas as pl
from jax.experimental.pallas import tpu as pltpu


# ---------------------------------------------------------------------------
# Kernels
# ---------------------------------------------------------------------------

def _mm_square_small_kernel(x_ref, o_ref):
    # Single-block path: t = x @ x ; out = 4 * t * t
    t = jnp.dot(x_ref[...], x_ref[...], preferred_element_type=jnp.float32)
    o_ref[...] = 4.0 * t * t


def _mm_square_tiled_kernel(a_ref, b_ref, o_ref):
    # Output tile is resident across the K axis (out index_map ignores k),
    # so accumulate the f32 matmul directly into o_ref -- no scratch needed.
    @pl.when(pl.program_id(2) == 0)
    def _():
        o_ref[...] = jnp.zeros_like(o_ref)

    o_ref[...] += jnp.dot(
        a_ref[...], b_ref[...], preferred_element_type=jnp.float32
    )

    # Last K step: fused epilogue 4 * t * t, strictly after the reduction.
    @pl.when(pl.program_id(2) == pl.num_programs(2) - 1)
    def _():
        t = o_ref[...]
        o_ref[...] = 4.0 * t * t


# ---------------------------------------------------------------------------
# Wrapper
# ---------------------------------------------------------------------------

def _round_up(x: int, m: int) -> int:
    return ((x + m - 1) // m) * m


def _pick_tile(mp: int, want: int) -> int:
    """Largest multiple of 128 that divides mp and is <= want (>= 128)."""
    t = max(128, min(want, mp))
    t = (t // 128) * 128
    while mp % t != 0:   # terminates: mp is a multiple of 128
        t -= 128
    return t


def model_forward(x: jax.Array, *, tm: int = 1024, tn: int = 1024,
                  tk: int = 512) -> jax.Array:
    m, n = x.shape
    assert m == n, "torch.mm(input, input) requires a square matrix"
    x = x.astype(jnp.float32)

    # ---- Tiny-input fast path: one full-array block, no grid. -------------
    if m <= 256:
        mp = _round_up(m, 128)
        x_p = (x if mp == m
               else jnp.zeros((mp, mp), jnp.float32).at[:m, :m].set(x))
        out_p = pl.pallas_call(
            _mm_square_small_kernel,
            out_shape=jax.ShapeDtypeStruct((mp, mp), jnp.float32),
        )(x_p)
        return out_p if mp == m else out_p[:m, :m]

    # ---- Tiled path. -------------------------------------------------------
    mp = _round_up(m, 128)
    tm = _pick_tile(mp, tm)
    tn = _pick_tile(mp, tn)
    tk = _pick_tile(mp, tk)

    # Megacore: make sure at least one parallel axis has >= 2 blocks so the
    # second TensorCore (v7x) is not idle for mid-sized matrices.
    if (mp // tm) * (mp // tn) < 2:
        tm = _pick_tile(mp, max(128, mp // 2))

    # Zero padding is exact for the top-left m x m block of x_p @ x_p.
    x_p = (x if mp == m
           else jnp.zeros((mp, mp), jnp.float32).at[:m, :m].set(x))

    grid = (mp // tm, mp // tn, mp // tk)

    out_p = pl.pallas_call(
        _mm_square_tiled_kernel,
        out_shape=jax.ShapeDtypeStruct((mp, mp), jnp.float32),
        grid=grid,
        in_specs=[
            pl.BlockSpec((tm, tk), lambda i, j, k: (i, k)),  # lhs tiles of x
            pl.BlockSpec((tk, tn), lambda i, j, k: (k, j)),  # rhs tiles of x
        ],
        out_specs=pl.BlockSpec((tm, tn), lambda i, j, k: (i, j)),
        compiler_params=pltpu.CompilerParams(
            dimension_semantics=("parallel", "parallel", "arbitrary"),
            vmem_limit_bytes=48 * 1024 * 1024,
        ),
        cost_estimate=pl.CostEstimate(
            flops=2 * mp * mp * mp + 3 * mp * mp,
            transcendentals=0,
            # Tiled re-reads of the inputs + one write of the output.
            bytes_accessed=4 * mp * mp * (mp // tm + mp // tn) + 4 * mp * mp,
        ),
    )(x_p, x_p)

    return out_p if mp == m else out_p[:m, :m]


# ---------------------------------------------------------------------------
# Self-test
# ---------------------------------------------------------------------------

def _reference(x: jax.Array) -> jax.Array:
    t = jnp.dot(x, x, precision=jax.lax.Precision.HIGHEST)
    return 4.0 * t * t


def _check(out: jax.Array, ref: jax.Array, name: str) -> None:
    err = float(jnp.max(jnp.abs(out - ref)))
    scale = float(jnp.max(jnp.abs(ref))) + 1e-6
    assert err <= 2e-2 * scale, (name, err, scale)


if __name__ == "__main__":
    key = jax.random.PRNGKey(0)
    k0, k1, k2 = jax.random.split(key, 3)

    # Spec-sized input (16x16): tiny-input fast path.
    x16 = jax.random.normal(k0, (16, 16), dtype=jnp.float32)
    out16 = model_forward(x16)
    jax.block_until_ready(out16)
    assert out16.shape == (16, 16)
    _check(out16, _reference(x16), "16x16")

    # Misaligned mid-size input: padding + tiled path + megacore tile cap.
    x300 = jax.random.normal(k1, (300, 300), dtype=jnp.float32)
    out300 = model_forward(x300)
    jax.block_until_ready(out300)
    _check(out300, _reference(x300), "300x300")

    # Aligned larger input: multi-step K reduction (init/accumulate/finalize).
    x1k = jax.random.normal(k2, (1024, 1024), dtype=jnp.float32)
    out1k = model_forward(x1k)
    jax.block_until_ready(out1k)
    _check(out1k, _reference(x1k), "1024x1024")

    print("KERNEL_OK")
</pallas_src>

<mosaic_0001>
module attributes {stable_mosaic.version = 11 : i64} {
  func.func @_mm_square_small_kernel(%arg0: memref<128x128xf32, #tpu.memory_space<vmem>>, %arg1: memref<128x128xf32, #tpu.memory_space<vmem>>) attributes {dimension_semantics = [], scalar_prefetch = 0 : i64, scratch_operands = 0 : i64, tpu.core_type = #tpu.core_type<tc>} {
    %c0 = arith.constant 0 : index
    %c0_0 = arith.constant 0 : index
    %0 = vector.load %arg0[%c0, %c0_0] : memref<128x128xf32, #tpu.memory_space<vmem>>, vector<128x128xf32>
    %c0_1 = arith.constant 0 : index
    %c0_2 = arith.constant 0 : index
    %1 = vector.load %arg0[%c0_1, %c0_2] : memref<128x128xf32, #tpu.memory_space<vmem>>, vector<128x128xf32>
    %cst = arith.constant dense<0.000000e+00> : vector<128x128xf32>
    %2 = tpu.matmul %0, %1, %cst {dimension_numbers = #tpu.dot_dimension_numbers<[1], [0], [0], [1], [0, 0, 1, 1], [], []>} : vector<128x128xf32>, vector<128x128xf32>, vector<128x128xf32> -> vector<128x128xf32>
    %cst_3 = arith.constant 4.000000e+00 : f32
    %3 = vector.broadcast %cst_3 : f32 to vector<128x128xf32>
    %4 = arith.mulf %3, %2 : vector<128x128xf32>
    %5 = arith.mulf %4, %2 : vector<128x128xf32>
    %c0_4 = arith.constant 0 : index
    %c0_5 = arith.constant 0 : index
    %6 = vector.load %arg1[%c0_4, %c0_5] : memref<128x128xf32, #tpu.memory_space<vmem>>, vector<128x128xf32>
    tpu.vector_store %arg1[%c0_4, %c0_5], %5 {strides = array<i32>} : memref<128x128xf32, #tpu.memory_space<vmem>>, vector<128x128xf32>,
    return
  }
}

</mosaic_0001>

<bundles_post_ra>
// kernel: tpu_custom_call.1
= control target key start
LH: loop header
LB: loop body
LE: loop exit
PB: predicated region body
PF: predicated region fallthrough
CT: control target
= control target key end

     0   :  { %6 = vsyncpa [#allocation3], 0  ;;  %s485_s0 = inlined_call_operand.hbm [shape: f32[128,128], index: 0, kind: input, shape index: {}]   ;;  %s486_s1 = inlined_call_operand.hbm [shape: f32[128,128], index: 1, kind: output, shape index: {}]  }
   0x1   :  { %7 = vsyncpa [#allocation4], 0  ;;  %s417_s6 = smov [#allocation2]  }
   0x2   :  { %s13_s7 = sshll.u32 %s417_s6, 4  ;;  %s14_s7 = int_to_ptr.vmem [resolvable:$true] %s13_s7 }
   0x3   :  { %s381_s8 = scalar_lea.vmem %s14_s7, 2048  ;;  %p386_p1 = scmp.lt.s32.totalorder %s14_s7, %s14_s7 }
   0x4   :  { %p382_p0 = scmp.ne.s32.totalorder %s14_s7, %s381_s8  ;;  %p387_p2 = scmp.lt.s32.totalorder %s381_s8, %s381_s8 }
   0x6   :  { %p388_p3 = por %p387_p2, %p386_p1 }
   0x8   :  { %p389_p4 = pnand %p388_p3, %p382_p0 }
   0xa   :  { %392 = shalt.err (!%p389_p4)
}
   0xb   :  { %s418_s9 = smov 128   ;;  %s419_s10 = smov 8  }
   0xc   :  { %19 = dma.hbm_to_vmem [thread:$0]  %s485_s0, 2048, %s14_s7, [#allocation3], %s418_s9, %s418_s9, %s419_s10  }
   0xd   :  { %413 = dma.done.wait [#allocation3], 2048  }
   0xe   :  { %414 = vsyncadd [#allocation3], 4294965248  ;;  %v437_v0 = vld [vmem:[#allocation2 + $0x78] sm:$0xff]  ;;  %v439_v1 = vld [vmem:[#allocation2 + $0x70] sm:$0xff]  ;;  %s420_s0 = smov [#allocation5]  }
   0xf   :  { %281 = vmatprep.subr.mxu0 %v437_v0  ;;  %337 = vmatprep.subr.mxu1 %v437_v0  ;;  %v445_v2 = vld [vmem:[#allocation2 + $0x68] sm:$0xff]  ;;  %v451_v3 = vld [vmem:[#allocation2 + $0x60] sm:$0xff]  ;;  %v457_v4 = vld [vmem:[#allocation2 + $0x58] sm:$0xff]  ;;  %s237_s13 = sshll.u32 %s420_s0, 4  ;;  %s238_s13 = int_to_ptr.vmem [resolvable:$true] %s237_s13 }
  0x10   :  { %282 = vmatpush3.msra.mxu0 %v437_v0  ;;  %353 = vmatpush3.msra.mxu1 %v437_v0  ;;  %v463_v5 = vld [vmem:[#allocation2 + $0x50] sm:$0xff]  ;;  %v32_v6 = vld [vmem:[#allocation2 + $0x48] sm:$0xff]  ;;  %v31_v7 = vld [vmem:[#allocation2 + $0x40] sm:$0xff]  ;;  %s393_s14 = scalar_lea.vmem %s238_s13, 2048  ;;  %p398_p6 = scmp.lt.s32.totalorder %s238_s13, %s238_s13 }
  0x11   :  { %283 = vmatprep.subr.mxu0 %v439_v1  ;;  %338 = vmatprep.subr.mxu1 %v439_v1  ;;  %v30_v8 = vld [vmem:[#allocation2 + $0x38] sm:$0xff]  ;;  %v29_v9 = vld [vmem:[#allocation2 + $0x30] sm:$0xff]  ;;  %v28_v10 = vld [vmem:[#allocation2 + $0x28] sm:$0xff]  ;;  %p394_p5 = scmp.ne.s32.totalorder %s238_s13, %s393_s14  ;;  %p399_p7 = scmp.lt.s32.totalorder %s393_s14, %s393_s14 }
  0x12   :  { %284 = vmatpush3.msra.mxu0 %v439_v1  ;;  %354 = vmatpush3.msra.mxu1 %v439_v1  ;;  %v27_v11 = vld [vmem:[#allocation2 + $0x20] sm:$0xff]  ;;  %v26_v12 = vld [vmem:[#allocation2 + $0x18] sm:$0xff]  ;;  %v25_v13 = vld [vmem:[#allocation2 + $0x10] sm:$0xff] }
  0x13   :  { %285 = vmatprep.subr.mxu0 %v445_v2  ;;  %339 = vmatprep.subr.mxu1 %v445_v2  ;;  %v24_v14 = vld [vmem:[#allocation2 + $0x8] sm:$0xff]  ;;  %v23_v15 = vld [vmem:[#allocation2] sm:$0xff]  ;;  %p400_p8 = por %p399_p7, %p398_p6 }
  0x14   :  { %286 = vmatpush3.msra.mxu0 %v445_v2  ;;  %355 = vmatpush3.msra.mxu1 %v445_v2 }
  0x15   :  { %287 = vmatprep.subr.mxu0 %v451_v3  ;;  %340 = vmatprep.subr.mxu1 %v451_v3  ;;  %p401_p9 = pnand %p400_p8, %p394_p5 }
  0x16   :  { %288 = vmatpush3.msra.mxu0 %v451_v3  ;;  %356 = vmatpush3.msra.mxu1 %v451_v3 }
  0x17   :  { %289 = vmatprep.subr.mxu0 %v457_v4  ;;  %341 = vmatprep.subr.mxu1 %v457_v4 }
  0x18   :  { %290 = vmatpush3.msra.mxu0 %v457_v4  ;;  %357 = vmatpush3.msra.mxu1 %v457_v4 }
  0x19   :  { %291 = vmatprep.subr.mxu0 %v463_v5  ;;  %342 = vmatprep.subr.mxu1 %v463_v5 }
  0x1a   :  { %292 = vmatpush3.msra.mxu0 %v463_v5  ;;  %358 = vmatpush3.msra.mxu1 %v463_v5 }
  0x1b   :  { %293 = vmatprep.subr.mxu0 %v32_v6  ;;  %343 = vmatprep.subr.mxu1 %v32_v6 }
  0x1c   :  { %294 = vmatpush3.msra.mxu0 %v32_v6  ;;  %359 = vmatpush3.msra.mxu1 %v32_v6 }
  0x1d   :  { %295 = vmatprep.subr.mxu0 %v31_v7  ;;  %344 = vmatprep.subr.mxu1 %v31_v7 }
  0x1e   :  { %296 = vmatpush3.msra.mxu0 %v31_v7  ;;  %360 = vmatpush3.msra.mxu1 %v31_v7 }
  0x1f   :  { %297 = vmatprep.subr.mxu0 %v30_v8  ;;  %345 = vmatprep.subr.mxu1 %v30_v8 }
  0x20   :  { %298 = vmatpush3.msra.mxu0 %v30_v8  ;;  %361 = vmatpush3.msra.mxu1 %v30_v8 }
  0x21   :  { %299 = vmatprep.subr.mxu0 %v29_v9  ;;  %346 = vmatprep.subr.mxu1 %v29_v9 }
  0x22   :  { %300 = vmatpush3.msra.mxu0 %v29_v9  ;;  %362 = vmatpush3.msra.mxu1 %v29_v9 }
  0x23   :  { %301 = vmatprep.subr.mxu0 %v28_v10  ;;  %347 = vmatprep.subr.mxu1 %v28_v10 }
  0x24   :  { %302 = vmatpush3.msra.mxu0 %v28_v10  ;;  %363 = vmatpush3.msra.mxu1 %v28_v10 }
  0x25   :  { %303 = vmatprep.subr.mxu0 %v27_v11  ;;  %348 = vmatprep.subr.mxu1 %v27_v11 }
  0x26   :  { %304 = vmatpush3.msra.mxu0 %v27_v11  ;;  %364 = vmatpush3.msra.mxu1 %v27_v11 }
  0x27   :  { %305 = vmatprep.subr.mxu0 %v26_v12  ;;  %349 = vmatprep.subr.mxu1 %v26_v12 }
  0x28   :  { %306 = vmatpush3.msra.mxu0 %v26_v12  ;;  %365 = vmatpush3.msra.mxu1 %v26_v12 }
  0x29   :  { %307 = vmatprep.subr.mxu0 %v25_v13  ;;  %350 = vmatprep.subr.mxu1 %v25_v13 }
  0x2a   :  { %308 = vmatpush3.msra.mxu0 %v25_v13  ;;  %366 = vmatpush3.msra.mxu1 %v25_v13 }
  0x2b   :  { %309 = vmatprep.subr.mxu0 %v24_v14  ;;  %351 = vmatprep.subr.mxu1 %v24_v14 }
  0x2c   :  { %310 = vmatpush3.msra.mxu0 %v24_v14  ;;  %367 = vmatpush3.msra.mxu1 %v24_v14 }
  0x2d   :  { %311 = vmatprep.subr.mxu0 %v23_v15  ;;  %352 = vmatprep.subr.mxu1 %v23_v15 }
  0x2e   :  { %312 = vmatpush3.msra.mxu0 %v23_v15  ;;  %368 = vmatpush3.msra.mxu1 %v23_v15 }
  0x2f   :  { %313 = vmatprep.mubr.f32.mxu0 %v23_v15  ;;  %325 = vmatprep.mubr.f32.mxu1 %v31_v7 }
  0x30   :  { %314 = vmatmul.mubr.f32.vlgmr.msra.gmra.mxu0 %v24_v14  ;;  %326 = vmatmul.mubr.f32.vlgmr.msra.gmra.mxu1 %v32_v6 }
  0x31   :  { %316 = vmatprep.mubr.f32.mxu0 %v25_v13  ;;  %328 = vmatprep.mubr.f32.mxu1 %v463_v5 }
  0x34   :  { %317 = vmatmul.mubr.f32.gmra.mxu0 %v26_v12  ;;  %329 = vmatmul.mubr.f32.gmra.mxu1 %v457_v4 }
  0x35   :  { %319 = vmatprep.mubr.f32.mxu0 %v27_v11  ;;  %331 = vmatprep.mubr.f32.mxu1 %v451_v3 }
  0x38   :  { %320 = vmatmul.mubr.f32.gmra.mxu0 %v28_v10  ;;  %332 = vmatmul.mubr.f32.gmra.mxu1 %v445_v2 }
  0x39   :  { %322 = vmatprep.mubr.f32.mxu0 %v29_v9  ;;  %334 = vmatprep.mubr.f32.mxu1 %v439_v1 }
  0x3c   :  { %323 = vmatmul.mubr.f32.gmra.mxu0 %v30_v8  ;;  %335 = vmatmul.mubr.f32.gmra.mxu1 %v437_v0 }
  0xf0   :  { %v315_v16 = vpop.f32.mrf.mxu0  ;;  %v327_v17 = vpop.f32.mrf.mxu1 }
  0xf1   :  { %v185_v18 = vmul.f32 4.0, %v315_v16  ;;  %v193_v19 = vmul.f32 4.0, %v327_v17 }
  0xf2   :  { %v105_v20 = vpop.f32.mrf.mxu0  ;;  %v145_v21 = vpop.f32.mrf.mxu1 }
  0xf3   :  { %v201_v22 = vmul.f32 %v315_v16, %v185_v18  ;;  %v209_v23 = vmul.f32 %v327_v17, %v193_v19  ;;  %v184_v24 = vmul.f32 4.0, %v105_v20  ;;  %v192_v25 = vmul.f32 4.0, %v145_v21 }
  0xf4   :  { %v318_v26 = vpop.f32.mrf.mxu0  ;;  %v330_v27 = vpop.f32.mrf.mxu1 }
  0xf5   :  { %217 = vst [vmem:[#allocation5 + $0x8] sm:$0xff] %v201_v22  ;;  %225 = vst [vmem:[#allocation5 + $0x48] sm:$0xff] %v209_v23  ;;  %v200_v28 = vmul.f32 %v184_v24, %v105_v20  ;;  %v208_v29 = vmul.f32 %v192_v25, %v145_v21  ;;  %v187_v30 = vmul.f32 4.0, %v318_v26  ;;  %v195_v31 = vmul.f32 4.0, %v330_v27 }
  0xf6   :  { %v115_v32 = vpop.f32.mrf.mxu0  ;;  %v155_v33 = vpop.f32.mrf.mxu1 }
  0xf7   :  { %216 = vst [vmem:[#allocation5] sm:$0xff] %v200_v28  ;;  %224 = vst [vmem:[#allocation5 + $0x40] sm:$0xff] %v208_v29  ;;  %v203_v34 = vmul.f32 %v318_v26, %v187_v30  ;;  %v211_v35 = vmul.f32 %v330_v27, %v195_v31  ;;  %v186_v36 = vmul.f32 4.0, %v115_v32  ;;  %v194_v37 = vmul.f32 4.0, %v155_v33 }
  0xf8   :  { %v321_v38 = vpop.f32.mrf.mxu0  ;;  %v333_v39 = vpop.f32.mrf.mxu1 }
  0xf9   :  { %219 = vst [vmem:[#allocation5 + $0x18] sm:$0xff] %v203_v34  ;;  %227 = vst [vmem:[#allocation5 + $0x58] sm:$0xff] %v211_v35  ;;  %v202_v40 = vmul.f32 %v186_v36, %v115_v32  ;;  %v210_v41 = vmul.f32 %v194_v37, %v155_v33  ;;  %v189_v42 = vmul.f32 4.0, %v321_v38  ;;  %v197_v43 = vmul.f32 4.0, %v333_v39 }
  0xfa   :  { %v125_v44 = vpop.f32.mrf.mxu0  ;;  %v165_v45 = vpop.f32.mrf.mxu1 }
  0xfb   :  { %218 = vst [vmem:[#allocation5 + $0x10] sm:$0xff] %v202_v40  ;;  %226 = vst [vmem:[#allocation5 + $0x50] sm:$0xff] %v210_v41  ;;  %v205_v46 = vmul.f32 %v321_v38, %v189_v42  ;;  %v213_v47 = vmul.f32 %v333_v39, %v197_v43  ;;  %v188_v48 = vmul.f32 4.0, %v125_v44  ;;  %v196_v49 = vmul.f32 4.0, %v165_v45 }
  0xfc   :  { %v324_v50 = vpop.f32.mrf.mxu0  ;;  %v336_v51 = vpop.f32.mrf.mxu1 }
  0xfd   :  { %221 = vst [vmem:[#allocation5 + $0x28] sm:$0xff] %v205_v46  ;;  %229 = vst [vmem:[#allocation5 + $0x68] sm:$0xff] %v213_v47  ;;  %v204_v52 = vmul.f32 %v188_v48, %v125_v44  ;;  %v212_v53 = vmul.f32 %v196_v49, %v165_v45  ;;  %v191_v54 = vmul.f32 4.0, %v324_v50  ;;  %v199_v55 = vmul.f32 4.0, %v336_v51 }
  0xfe   :  { %v135_v56 = vpop.f32.mrf.mxu0  ;;  %v175_v57 = vpop.f32.mrf.mxu1 }
  0xff   :  { %220 = vst [vmem:[#allocation5 + $0x20] sm:$0xff] %v204_v52  ;;  %228 = vst [vmem:[#allocation5 + $0x60] sm:$0xff] %v212_v53  ;;  %v207_v58 = vmul.f32 %v324_v50, %v191_v54  ;;  %v215_v59 = vmul.f32 %v336_v51, %v199_v55  ;;  %v190_v60 = vmul.f32 4.0, %v135_v56  ;;  %v198_v61 = vmul.f32 4.0, %v175_v57 }
 0x101   :  { %223 = vst [vmem:[#allocation5 + $0x38] sm:$0xff] %v207_v58  ;;  %231 = vst [vmem:[#allocation5 + $0x78] sm:$0xff] %v215_v59  ;;  %v206_v62 = vmul.f32 %v190_v60, %v135_v56  ;;  %v214_v63 = vmul.f32 %v198_v61, %v175_v57 }
 0x103   :  { %222 = vst [vmem:[#allocation5 + $0x30] sm:$0xff] %v206_v62  ;;  %230 = vst [vmem:[#allocation5 + $0x70] sm:$0xff] %v214_v63 }
 0x104   :  { %404 = shalt.err (!%p401_p9)
}
 0x105   :  { %243 = dma.vmem_to_hbm [thread:$0]  %s238_s13, 2048, %s486_s1, [#allocation4], %s418_s9, %s418_s9, %s419_s10  }
 0x106   :  { %415 = dma.done.wait [#allocation4], 2048  }
 0x107   :  { %416 = vsyncadd [#allocation4], 4294965248 }
 0x108   :  { %247 = vsyncpa [#allocation3], 1 }
 0x109   :  { %248 = vsyncpa [#allocation4], 1 }

</bundles_post_ra>
